<compile_context>
chip_gen: v7x
topology: tpu7x:2x2x1
jax: 0.10.0
libtpu: 0.0.40
codegen_flags: <defaults>
</compile_context>

<pallas_src>
import jax
import jax.numpy as jnp
from jax.experimental import pallas as pl
from jax.experimental.pallas import tpu as pltpu


def _round_up(x, m):
    return ((x + m - 1) // m) * m


def head_kernel(feat_ref, wc1_ref, bc1_ref, w2_ref, b2_ref, out_ref):
    tb, hw, c = feat_ref.shape

    # ---- DenseNet head: ReLU -> global avg pool (1/HW folded into wc1) ----
    # bf16 ReLU, f32 elementwise accumulation across spatial chunks into a
    # (tb, chunk, C) partial; a single cross-sublane (XLU) reduce per tile.
    chunk = min(16, hw)
    n_full = hw // chunk
    rem = hw - n_full * chunk

    partial = jnp.maximum(feat_ref[:, :chunk, :], 0).astype(jnp.float32)
    for j in range(1, n_full):                     # static trace-time unroll
        x = feat_ref[:, j * chunk:(j + 1) * chunk, :]
        partial = partial + jnp.maximum(x, 0).astype(jnp.float32)
    pooled = jnp.sum(partial, axis=1)              # (tb, C) f32  -- ReLU'd sum
    if rem:
        x = feat_ref[:, n_full * chunk:hw, :]
        pooled = pooled + jnp.sum(jnp.maximum(x, 0).astype(jnp.float32), axis=1)

    # ---- fused [replaced classifier (C->512)] ∘ [fc1 (512->256)] + ReLU ----
    h = jnp.dot(pooled.astype(wc1_ref.dtype), wc1_ref[...],
                preferred_element_type=jnp.float32) + bc1_ref[...]
    h = jnp.maximum(h, 0.0)

    # ---- fc2: (256 -> num_classes, zero-padded to lane-dense 128*) ----
    out = jnp.dot(h.astype(w2_ref.dtype), w2_ref[...],
                  preferred_element_type=jnp.float32) + b2_ref[...]
    out_ref[...] = out.astype(out_ref.dtype)


def prepare_params(wc_pt, bc, w1_pt, b1, w2_pt, b2, hw):
    """PyTorch-layout (out,in) f32 params -> fused kernel layout.

    classifier and fc1 are fused offline (no nonlinearity in between):
        Wc1 = Wc.T @ W1.T   (C, 256),   bc1 = bc @ W1.T + b1
    The 1/HW pooling scale is folded into Wc1. fc2 is zero-padded to a
    lane-dense multiple-of-128 output width. Weights bf16, biases f32.
    """
    num_classes = w2_pt.shape[0]
    out_pad = max(128, _round_up(num_classes, 128))

    wc1 = (wc_pt.T @ w1_pt.T) * (1.0 / float(hw))          # (C, 256) f32
    bc1 = (bc @ w1_pt.T + b1).reshape(1, -1)               # (1, 256) f32

    w2p = jnp.zeros((w2_pt.shape[1], out_pad), jnp.float32).at[:, :num_classes].set(w2_pt.T)
    b2p = jnp.zeros((1, out_pad), jnp.float32).at[:, :num_classes].set(b2)

    return (wc1.astype(jnp.bfloat16), bc1.astype(jnp.float32),
            w2p.astype(jnp.bfloat16), b2p.astype(jnp.float32))


def perceptron_multilabel_densenet_head(feats_nhwc, params, num_classes, *, tile_b=None):
    """feats_nhwc: (N, H, W, C) CHANNELS-LAST backbone feature maps.

    Fused head: relu -> global avg pool -> (classifier∘fc1) -> relu -> fc2.
    NOTE: the caller must provide NHWC; reshape(N, HW, C) is not a transpose.
    """
    N, H, W, C = feats_nhwc.shape
    HW = H * W
    if feats_nhwc.dtype != jnp.bfloat16:       # the one HBM-bound stream -> bf16
        feats_nhwc = feats_nhwc.astype(jnp.bfloat16)
    feats = feats_nhwc.reshape(N, HW, C)       # contiguous collapse, no transpose

    wc1, bc1, w2, b2 = params
    out_pad = w2.shape[1]

    # ---- generation-aware tiling: size from actual VMEM footprint ----
    itemsize = feats.dtype.itemsize
    sublane = 8 * (4 // itemsize)                         # bf16 -> 16, f32 -> 8
    per_sample = _round_up(HW, sublane) * _round_up(C, 128) * itemsize
    try:
        phys_vmem = int(pltpu.get_tpu_info().vmem_capacity_bytes)
    except Exception:
        phys_vmem = 64 << 20                              # v7x-safe fallback

    if tile_b is None:
        # ~55% of VMEM for the double-buffered feats stream; rest for
        # weights, output buffers and compiler scratch.
        tile_b = int(phys_vmem * 0.55) // (2 * per_sample)
    tile_b = min(int(tile_b), 256)
    if N > 8:                                             # >=2 grid steps (v7x: 2 TCs)
        tile_b = min(tile_b, _round_up(pl.cdiv(N, 2), 8))
    tile_b = max(8, (tile_b // 8) * 8)                    # sublane-aligned batch tile

    n_pad = (-N) % tile_b
    if n_pad:
        feats = jnp.pad(feats, ((0, n_pad), (0, 0), (0, 0)))
    n_total = N + n_pad
    grid = (n_total // tile_b,)

    weights_bytes = sum(int(p.size) * p.dtype.itemsize for p in params)
    vmem_limit = (2 * tile_b * per_sample                 # double-buffered feats
                  + 2 * weights_bytes                     # resident (double-buffered) weights
                  + 2 * tile_b * out_pad * 4              # output buffers
                  + (4 << 20))                            # scratch headroom
    vmem_limit = int(min(max(vmem_limit, 16 << 20), phys_vmem - (8 << 20)))

    flops = 2 * n_total * (HW * C + C * 256 + 256 * out_pad)
    bytes_accessed = (feats.size * feats.dtype.itemsize + weights_bytes
                      + n_total * out_pad * 4)

    out = pl.pallas_call(
        head_kernel,
        out_shape=jax.ShapeDtypeStruct((n_total, out_pad), jnp.float32),
        grid=grid,
        in_specs=[
            pl.BlockSpec((tile_b, HW, C), lambda i: (i, 0, 0)),   # pipelined feats
            pl.BlockSpec(wc1.shape, lambda i: (0, 0)),            # resident weights
            pl.BlockSpec(bc1.shape, lambda i: (0, 0)),
            pl.BlockSpec(w2.shape, lambda i: (0, 0)),
            pl.BlockSpec(b2.shape, lambda i: (0, 0)),
        ],
        out_specs=pl.BlockSpec((tile_b, out_pad), lambda i: (i, 0)),
        compiler_params=pltpu.CompilerParams(
            dimension_semantics=("parallel",),
            vmem_limit_bytes=vmem_limit,
        ),
        cost_estimate=pl.CostEstimate(
            flops=int(flops), transcendentals=0, bytes_accessed=int(bytes_accessed)),
    )(feats, wc1, bc1, w2, b2)

    return out[:N, :num_classes]


def _linear_init(kw, kb, fan_in, fan_out):
    """Deterministic PyTorch-Linear-style init: U(-1/sqrt(fan_in), 1/sqrt(fan_in))."""
    bound = 1.0 / float(fan_in) ** 0.5
    w = jax.random.uniform(kw, (fan_out, fan_in), jnp.float32, -bound, bound)  # (out, in)
    b = jax.random.uniform(kb, (fan_out,), jnp.float32, -bound, bound)
    return w, b


if __name__ == "__main__":
    key = jax.random.PRNGKey(0)
    keys = jax.random.split(key, 7)

    # Small, module-consistent shapes (real DenseNet-121: C=1024, H=W=7).
    N, H, W, C = 16, 4, 4, 64
    NUM_CLASSES = 8

    # TODO(synk): the DenseNet-121 convolutional feature extractor
    # (original_model.features) is an injected external backbone and is not
    # reproduced; the kernel consumes its channels-last feature-map output
    # directly and implements the replaced classifier + relu(fc1) + fc2
    # exactly (no sigmoid in forward).
    feats = jax.random.normal(keys[0], (N, H, W, C), jnp.float32).astype(jnp.bfloat16)

    wc_pt, bc = _linear_init(keys[1], keys[2], C, 512)            # replaced classifier
    w1_pt, b1 = _linear_init(keys[3], keys[4], 512, 256)          # fc1
    w2_pt, b2 = _linear_init(keys[5], keys[6], 256, NUM_CLASSES)  # fc2

    params = prepare_params(wc_pt, bc, w1_pt, b1, w2_pt, b2, hw=H * W)

    out = perceptron_multilabel_densenet_head(feats, params, NUM_CLASSES)
    out = jax.block_until_ready(out)
    assert out.shape == (N, NUM_CLASSES), out.shape

    # --- Reference #1: mirrors the kernel's fused mixed-precision numerics.
    f32 = jnp.float32
    wc1_b, bc1_b, w2_b, b2_b = params
    pooled_sum = jnp.sum(jnp.maximum(feats.astype(f32), 0.0), axis=(1, 2))    # (N, C)
    h = jnp.dot(pooled_sum.astype(jnp.bfloat16), wc1_b,
                preferred_element_type=f32) + bc1_b
    h = jnp.maximum(h, 0.0)
    ref = jnp.dot(h.astype(jnp.bfloat16), w2_b, preferred_element_type=f32) + b2_b
    ref = ref[:, :NUM_CLASSES]
    assert jnp.allclose(out, ref, atol=2e-3, rtol=2e-3), \
        float(jnp.max(jnp.abs(out - ref)))

    # --- Reference #2: pure-f32 PyTorch-semantics forward (loose bf16 tolerance).
    pooled_mean = jnp.mean(jnp.maximum(feats.astype(f32), 0.0), axis=(1, 2))
    r = pooled_mean @ wc_pt.T + bc
    r = jnp.maximum(r @ w1_pt.T + b1, 0.0)
    r = r @ w2_pt.T + b2
    assert jnp.allclose(out, r, atol=5e-2, rtol=5e-2), \
        float(jnp.max(jnp.abs(out - r)))

    print("KERNEL_OK")
</pallas_src>

<mosaic_0001>
module attributes {stable_mosaic.version = 11 : i64} {
  func.func @head_kernel(%arg0: i32, %arg1: memref<8x16x64xbf16, #tpu.memory_space<vmem>>, %arg2: memref<64x256xbf16, #tpu.memory_space<vmem>>, %arg3: memref<1x256xf32, #tpu.memory_space<vmem>>, %arg4: memref<256x128xbf16, #tpu.memory_space<vmem>>, %arg5: memref<1x128xf32, #tpu.memory_space<vmem>>, %arg6: memref<8x128xf32, #tpu.memory_space<vmem>>) attributes {dimension_semantics = [#tpu.dimension_semantics<parallel>], iteration_bounds = array<i64: 2>, scalar_prefetch = 0 : i64, scratch_operands = 0 : i64, tpu.core_type = #tpu.core_type<tc>, window_params = [{transform_indices = @transform_0, window_bounds = array<i64: 8, 16, 64>}, {pipeline_mode = #tpu.pipeline_mode<synchronous>, transform_indices = @transform_1, window_bounds = array<i64: 64, 256>}, {pipeline_mode = #tpu.pipeline_mode<synchronous>, transform_indices = @transform_2, window_bounds = array<i64: 1, 256>}, {pipeline_mode = #tpu.pipeline_mode<synchronous>, transform_indices = @transform_3, window_bounds = array<i64: 256, 128>}, {pipeline_mode = #tpu.pipeline_mode<synchronous>, transform_indices = @transform_4, window_bounds = array<i64: 1, 128>}, {transform_indices = @transform_5, window_bounds = array<i64: 8, 128>}]} {
    %c0 = arith.constant 0 : index
    %c0_0 = arith.constant 0 : index
    %c0_1 = arith.constant 0 : index
    %0 = vector.load %arg1[%c0, %c0_0, %c0_1] : memref<8x16x64xbf16, #tpu.memory_space<vmem>>, vector<8x16x64xbf16>
    %cst = arith.constant 0.000000e+00 : bf16
    %1 = vector.broadcast %cst : bf16 to vector<8x16x64xbf16>
    %2 = arith.maximumf %0, %1 : vector<8x16x64xbf16>
    %3 = arith.extf %2 : vector<8x16x64xbf16> to vector<8x16x64xf32>
    %cst_2 = arith.constant dense<0.000000e+00> : vector<8x64xf32>
    %4 = vector.multi_reduction <add>, %3, %cst_2 [1] : vector<8x16x64xf32> to vector<8x64xf32>
    %5 = arith.truncf %4 : vector<8x64xf32> to vector<8x64xbf16>
    %c0_3 = arith.constant 0 : index
    %c0_4 = arith.constant 0 : index
    %6 = vector.load %arg2[%c0_3, %c0_4] : memref<64x256xbf16, #tpu.memory_space<vmem>>, vector<64x256xbf16>
    %cst_5 = arith.constant dense<0.000000e+00> : vector<8x256xf32>
    %7 = tpu.matmul %5, %6, %cst_5 {dimension_numbers = #tpu.dot_dimension_numbers<[1], [0], [0], [1], [0, 0, 1, 1], [], []>} : vector<8x64xbf16>, vector<64x256xbf16>, vector<8x256xf32> -> vector<8x256xf32>
    %c0_6 = arith.constant 0 : index
    %c0_7 = arith.constant 0 : index
    %8 = vector.load %arg3[%c0_6, %c0_7] : memref<1x256xf32, #tpu.memory_space<vmem>>, vector<1x256xf32>
    %9 = vector.broadcast %8 : vector<1x256xf32> to vector<8x256xf32>
    %10 = arith.addf %7, %9 : vector<8x256xf32>
    %cst_8 = arith.constant 0.000000e+00 : f32
    %11 = vector.broadcast %cst_8 : f32 to vector<8x256xf32>
    %12 = arith.maximumf %10, %11 : vector<8x256xf32>
    %13 = arith.truncf %12 : vector<8x256xf32> to vector<8x256xbf16>
    %c0_9 = arith.constant 0 : index
    %c0_10 = arith.constant 0 : index
    %14 = vector.load %arg4[%c0_9, %c0_10] : memref<256x128xbf16, #tpu.memory_space<vmem>>, vector<256x128xbf16>
    %cst_11 = arith.constant dense<0.000000e+00> : vector<8x128xf32>
    %15 = tpu.matmul %13, %14, %cst_11 {dimension_numbers = #tpu.dot_dimension_numbers<[1], [0], [0], [1], [0, 0, 1, 1], [], []>} : vector<8x256xbf16>, vector<256x128xbf16>, vector<8x128xf32> -> vector<8x128xf32>
    %c0_12 = arith.constant 0 : index
    %c0_13 = arith.constant 0 : index
    %16 = vector.load %arg5[%c0_12, %c0_13] : memref<1x128xf32, #tpu.memory_space<vmem>>, vector<1x128xf32>
    %17 = vector.broadcast %16 : vector<1x128xf32> to vector<8x128xf32>
    %18 = arith.addf %15, %17 : vector<8x128xf32>
    %c0_14 = arith.constant 0 : index
    %c0_15 = arith.constant 0 : index
    %19 = vector.load %arg6[%c0_14, %c0_15] : memref<8x128xf32, #tpu.memory_space<vmem>>, vector<8x128xf32>
    tpu.vector_store %arg6[%c0_14, %c0_15], %18 {strides = array<i32>} : memref<8x128xf32, #tpu.memory_space<vmem>>, vector<8x128xf32>,
    return
  }
  func.func @transform_0(%arg0: i32) -> (i32, i32, i32) {
    %c0_i32 = arith.constant 0 : i32
    %c0_i32_0 = arith.constant 0 : i32
    %c0_i32_1 = arith.constant 0 : i32
    return %arg0, %c0_i32, %c0_i32_0 : i32, i32, i32
  }
  func.func @transform_1(%arg0: i32) -> (i32, i32) {
    %c0_i32 = arith.constant 0 : i32
    %c0_i32_0 = arith.constant 0 : i32
    %c0_i32_1 = arith.constant 0 : i32
    return %c0_i32, %c0_i32_0 : i32, i32
  }
  func.func @transform_2(%arg0: i32) -> (i32, i32) {
    %c0_i32 = arith.constant 0 : i32
    %c0_i32_0 = arith.constant 0 : i32
    %c0_i32_1 = arith.constant 0 : i32
    return %c0_i32, %c0_i32_0 : i32, i32
  }
  func.func @transform_3(%arg0: i32) -> (i32, i32) {
    %c0_i32 = arith.constant 0 : i32
    %c0_i32_0 = arith.constant 0 : i32
    %c0_i32_1 = arith.constant 0 : i32
    return %c0_i32, %c0_i32_0 : i32, i32
  }
  func.func @transform_4(%arg0: i32) -> (i32, i32) {
    %c0_i32 = arith.constant 0 : i32
    %c0_i32_0 = arith.constant 0 : i32
    %c0_i32_1 = arith.constant 0 : i32
    return %c0_i32, %c0_i32_0 : i32, i32
  }
  func.func @transform_5(%arg0: i32) -> (i32, i32) {
    %c0_i32 = arith.constant 0 : i32
    %c0_i32_0 = arith.constant 0 : i32
    return %arg0, %c0_i32 : i32, i32
  }
}

</mosaic_0001>

<bundles_post_ra>
// kernel: tpu_custom_call.1
= control target key start
LH: loop header
LB: loop body
LE: loop exit
PB: predicated region body
PF: predicated region fallthrough
CT: control target
= control target key end

     0   :  { %10 = vsyncpa [#allocation3], 0  ;;  %s1473_s0 = inlined_call_operand.hbm [shape: bf16[16,16,64], index: 0, kind: input, shape index: {}]   ;;  %s1474_s1 = inlined_call_operand.hbm [shape: bf16[64,256], index: 1, kind: input, shape index: {}]   ;;  %s1475_s2 = inlined_call_operand.vmem [shape: f32[1,256], index: 2, kind: input, shape index: {}]   ;;  %s1476_s3 = inlined_call_operand.hbm [shape: bf16[256,128], index: 3, kind: input, shape index: {}]   ;;  %s1477_s4 = inlined_call_operand.vmem [shape: f32[1,128], index: 4, kind: input, shape index: {}]   ;;  %s1478_s5 = inlined_call_operand.hbm [shape: f32[16,128], index: 5, kind: output, shape index: {}]  }
   0x1   :  { %12 = vsyncpa [#allocation3 + $0x1], 0 }
   0x2   :  { %13 = vsyncpa [#allocation6], 0 }
   0x3   :  { %14 = vsyncpa [#allocation4], 0 }
   0x4   :  { %16 = vsyncpa [#allocation4 + $0x1], 0  ;;  %s1187_s18 = smov 0   ;;  %s1189_s19 = smov 0  }
   0x5   :  { %s1191_s20 = smov 0   ;;  %s1193_s21 = smov 0  }
   0x6 LB: > { %s1208_s22 = sadd.s32 4294967295, %s1146_s21   ;;  %s822_s23 = sadd.s32 4294967294, %s1146_s21   ;;  %s1146_s21 = sphi %s1193_s21, %s1498_s21   ;;  %s1142_s20 = sphi %s1191_s20, %s1497_s20   ;;  %s1138_s19 = sphi %s1189_s19, %s1496_s19   ;;  %s1134_s18 = sphi %s1187_s18, %s1495_s18  }
   0x7   : > { %p42_p0 = scmp.ne.s32.totalorder %s1138_s19, %s1134_s18  ;;  %p1479_p1 = scmp.eq.s32.totalorder %s1208_s22, 0 }
   0x8   : > { %p156_p3 = scmp.eq.s32.totalorder %s822_s23, 1  ;;  %p823_p5 = scmp.ge.s32.totalorder %s1146_s21, 1 }
   0x9   : > { %p1217_p4 = por %p1479_p1, %p42_p0  ;;  %p163_p7 = scmp.lt.s32.totalorder %s1146_s21, 3 }
   0xa   : > { %p1222_p6 = por %p156_p3, %p42_p0  ;;  %s1148_s27 = smov [#allocation5]  }
   0xb   : > { %s1482_s24 = scalar_select %p1217_p4, 1, 0 }
   0xc   : > { %s1483_s25 = scalar_select %p1222_p6, 1, 0 }
   0xd   : > { %p1227_p8 = pnand %p823_p5, %p163_p7  ;;  %s175_s28 = sshll.u32 %s1148_s27, 4  ;;  %s1231_s28 = int_to_ptr.vmem [resolvable:$true] %s175_s28 }
   0xe   : > { %s1149_s30 = smov [#allocation7]   ;;  %s990_s9 = scalar_lea.hbm %s1474_s1, 1024 }
   0xf   : > { %p902_p9 = pneg %p1227_p8  ;;  %s191_s6 = sshll.u32 %s1149_s30, 4  ;;  %s1242_s6 = int_to_ptr.vmem [resolvable:$true] %s191_s6 }
  0x10   : > { %p991_p12 = scmp.ne.s32.totalorder %s1474_s1, %s990_s9  ;;  %p997_p5 = scmp.lt.u32.totalorder %s990_s9, %s1474_s1 }
  0x11   : > { %p1238_p11 = pnand %p902_p9, %p1479_p1 }
  0x13   : > { %p992_p13 = pneg %p1238_p11 }
  0x15   : > { %p993_p0 = pnand %p992_p13, %p991_p12 }
  0x17   : > { %p994_p3 = pneg %p993_p0 }
  0x19   : > { %p999_p7 = pnand %p997_p5, %p994_p3 }
  0x1b   : > { %1002 = shalt.err (!%p999_p7)
}
  0x1c   : > { %s1003_s14 = scalar_lea.vmem %s1231_s28, 1024  ;;  %p1011_p2 = scmp.lt.s32.totalorder %s1231_s28, %s1231_s28 }
  0x1d   : > { %p1004_p9 = scmp.ne.s32.totalorder %s1231_s28, %s1003_s14  ;;  %p1012_p12 = scmp.lt.s32.totalorder %s1003_s14, %s1003_s14 }
  0x1f   : > { %p1006_p10 = pnand %p1004_p9, %p992_p13  ;;  %p1013_p0 = por %p1012_p12, %p1011_p2 }
  0x21   : > { %p1007_p1 = pneg %p1006_p10 }
  0x23   : > { %p1014_p6 = pnand %p1013_p0, %p1007_p1 }
  0x25   : > { %1017 = shalt.err (!%p1014_p6)
}
  0x26   : > { %s1150_s15 = smov 128   ;;  %s1151_s16 = smov 8  }
  0x27   : > { %905 = dma.hbm_to_vmem [thread:$0]  (!%p1238_p11), %s1474_s1, 1024, %s1231_s28, [#allocation6], %s1150_s15, %s1150_s15, %s1151_s16  }
  0x28   : > { %s1018_s7 = scalar_lea.hbm %s1476_s3, 2048 }
  0x29   : > { %p1019_p2 = scmp.ne.s32.totalorder %s1476_s3, %s1018_s7  ;;  %p1025_p10 = scmp.lt.u32.totalorder %s1018_s7, %s1476_s3 }
  0x2b   : > { %p1021_p1 = pnand %p1019_p2, %p992_p13 }
  0x2d   : > { %p1022_p6 = pneg %p1021_p1 }
  0x2f   : > { %p1027_p3 = pnand %p1025_p10, %p1022_p6 }
  0x31   : > { %1030 = shalt.err (!%p1027_p3)
}
  0x32   : > { %s1031_s28 = scalar_lea.vmem %s1242_s6, 2048  ;;  %p1039_p12 = scmp.lt.s32.totalorder %s1242_s6, %s1242_s6 }
  0x33   : > { %p1032_p5 = scmp.ne.s32.totalorder %s1242_s6, %s1031_s28  ;;  %p1040_p0 = scmp.lt.s32.totalorder %s1031_s28, %s1031_s28 }
  0x35   : > { %p1034_p7 = pnand %p1032_p5, %p992_p13  ;;  %p1041_p2 = por %p1040_p0, %p1039_p12 }
  0x37   : > { %p1035_p9 = pneg %p1034_p7 }
  0x39   : > { %p1042_p1 = pnand %p1041_p2, %p1035_p9 }
  0x3b   : > { %1045 = shalt.err (!%p1042_p1)
}
  0x3c   : > { %s1152_s12 = smov 64   ;;  %s1153_s13 = smov 4  }
  0x3d   : > { %908 = dma.hbm_to_vmem [thread:$0]  (!%p1238_p11), %s1476_s3, 2048, %s1242_s6, [#allocation6], %s1152_s12, %s1152_s12, %s1153_s13  }
  0x3e   : > { %s1300_s16 = sadd.s32 1, %s1146_s21   ;;  %s29_s23 = sadd.s32 1, %s1142_s20 }
  0x3f   : > { %s26_s17 = ssub.s32 %s1146_s21, %s1300_s16  ;;  %p36_p6 = scmp.ne.s32.totalorder %s1142_s20, %s1138_s19 }
  0x40   : > { %p27_p13 = scmp.eq.s32.totalorder %s26_s17, 0  ;;  %p37_p10 = scmp.eq.s32.totalorder %s1146_s21, 0 }
  0x41   : > { %p1486_p5 = scmp.eq.s32.totalorder %s1208_s22, 1  ;;  %p919_p9 = scmp.lt.s32.totalorder %s1146_s21, 2 }
  0x42   : > { %s1309_s27 = scalar_select %p27_p13, %s1142_s20, %s29_s23  }
  0x43   : > { %p38_p3 = por %p37_p10, %p36_p6  ;;  %p1313_p7 = por %p1486_p5, %p36_p6 }
  0x44   : > { %s208_s30 = sand.u32 1, %s1142_s20   ;;  %s867_s6 = sshll.u32 %s1146_s21, 10 }
  0x45   : > { %s1487_s29 = scalar_select %p1313_p7, 1, 0 }
  0x46   : > { %s827_s7 = sshll.u32 %s208_s30, 6  ;;  %s1323_s10 = scalar_lea.hbm %s1473_s0, %s867_s6 }
  0x47   : > { %s212_s11 = scalar_lea.vmem [#allocation2], %s827_s7  ;;  %p1327_p11 = pnand %p919_p9, %p38_p3 }
  0x48   : > { %s220_s28 = sshll.u32 %s212_s11, 4  ;;  %s1331_s15 = scalar_lea.sflag [#allocation3], %s208_s30  ;;  %s1325_s28 = int_to_ptr.vmem [resolvable:$true] %s220_s28 }
  0x49   : > { %s1046_s17 = scalar_lea.hbm %s1323_s10, 1024  ;;  %p1048_p0 = pneg %p1327_p11 }
  0x4a   : > { %p1047_p12 = scmp.ne.s32.totalorder %s1323_s10, %s1046_s17  ;;  %s1051_s6 = scalar_lea.hbm %s1473_s0, 2048 }
  0x4b   : > { %p1052_p13 = scmp.lt.u32.totalorder %s1323_s10, %s1473_s0  ;;  %p1053_p6 = scmp.lt.u32.totalorder %s1051_s6, %s1046_s17 }
  0x4c   : > { %p1049_p2 = pnand %p1048_p0, %p1047_p12  ;;  %p1055_p3 = scmp.lt.u32.totalorder %s1046_s17, %s1323_s10 }
  0x4d   : > { %p1054_p10 = por %p1053_p6, %p1052_p13 }
  0x4e   : > { %p1050_p1 = pneg %p1049_p2 }
  0x4f   : > { %p1056_p5 = por %p1055_p3, %p1054_p10 }
  0x51   : > { %p1057_p9 = pnand %p1056_p5, %p1050_p1 }
  0x53   : > { %1060 = shalt.err (!%p1057_p9)
}
  0x54   : > { %s1061_s30 = scalar_lea.vmem %s1325_s28, 1024  ;;  %s1154_s11 = smov [#allocation2]  }
  0x55   : > { %p1062_p12 = scmp.ne.s32.totalorder %s1325_s28, %s1061_s30  ;;  %s1066_s23 = sshll.u32 %s1154_s11, 4  ;;  %s1067_s23 = int_to_ptr.vmem [resolvable:$false] %s1066_s23 }
  0x56   : > { %s1068_s7 = scalar_lea.vmem %s1067_s23, 2048  ;;  %p1069_p4 = scmp.lt.s32.totalorder %s1325_s28, %s1067_s23 }
  0x57   : > { %p1064_p2 = pnand %p1062_p12, %p1048_p0  ;;  %p1070_p13 = scmp.lt.s32.totalorder %s1068_s7, %s1061_s30 }
  0x59   : > { %p1065_p7 = pneg %p1064_p2  ;;  %p1071_p6 = por %p1070_p13, %p1069_p4 }
  0x5b   : > { %p1072_p10 = pnand %p1071_p6, %p1065_p7 }
  0x5d   : > { %1075 = shalt.err (!%p1072_p10)
}
  0x5e   : > { %912 = dma.hbm_to_vmem [thread:$0]  (!%p1327_p11), %s1323_s10, 1024, %s1325_s28, %s1331_s15, %s1152_s12, %s1152_s12, %s1153_s13  }
  0x5f   : > { %232 = sbr.rel (%p1227_p8) target bundleno = 602 (0x25a), region = 40  ;;  %s1365_s17 = sand.u32 (!%p1227_p8), 1, %s1138_s19  }
  0x60   : > { %s832_s6 = sshll.u32 (!%p1227_p8), %s1365_s17, 6  ;;  %s235_s8 = scalar_lea.sflag (!%p1227_p8), [#allocation3], %s1365_s17 }
  0x61   : > { %s1369_s9 = scalar_lea.vmem (!%p1227_p8), [#allocation2], %s832_s6  ;;  %p1489_p4 = scmp.ne.s32.totalorder (!%p1227_p8), %s1482_s24, 0 }
  0x66   : > { %1121 = dma.done.wait (%p1489_p4), %s235_s8, 1024  }
  0x67   : > { %1123 = vsyncadd (%p1489_p4), %s235_s8, 4294966272  ;;  %p1490_p7 = scmp.eq.s32.totalorder %s1208_s22, 0 }
  0x69   : > { %1125 = dma.done.wait (%p1490_p7), [#allocation6], 3072   ;;  %p1491_p8 = pmov %p1490_p7 }
  0x6a   : > { %v1155_v0 = vmov 0   ;;  %v962_v1 = vld [vmem:[#allocation5 + $0x4] ss:$8 sps:$4 sm:$0xff]   ;;  %v964_v2 = vld [vmem:[#allocation5] ss:$8 sps:$4 sm:$0xff]   ;;  %vm323_vm0 = vcmask 523264  }
  0x6b   : > { %1127 = vsyncadd (%p1491_p8), [#allocation6], 4294964224  ;;  %530 = vmatprep.mubr.bf16.mxu0 %v1155_v0  ;;  %498 = vmatprep.subr.bf16.mxu0 %v962_v1  ;;  %v965_v3 = vld [vmem:[#allocation5 + $0x14] ss:$8 sps:$4 sm:$0xff]   ;;  %v967_v4 = vld [vmem:[#allocation5 + $0x10] ss:$8 sps:$4 sm:$0xff]  }
  0x6c   : > { %499 = vmatpush1.bf16.msra.mxu0 %v964_v2  ;;  %v968_v5 = vld [vmem:[#allocation5 + $0x24] ss:$8 sps:$4 sm:$0xff]   ;;  %v970_v6 = vld [vmem:[#allocation5 + $0x20] ss:$8 sps:$4 sm:$0xff]   ;;  %v971_v9 = vld [vmem:[#allocation5 + $0x34] ss:$8 sps:$4 sm:$0xff]  }
  0x6d   : > { %500 = vmatprep.subr.bf16.mxu0 %v965_v3  ;;  %v275_v7 = vld [vmem:[%s1369_s9] sm:$0xf]  ;;  %v276_v8 = vld [vmem:[%s1369_s9 + $0x4] sm:$0xf]  ;;  %v277_v10 = vld [vmem:[%s1369_s9 + $0x8] sm:$0xf] }
  0x6e   : > { %v278_v11 = vld [vmem:[%s1369_s9 + $0xc] sm:$0xf]  ;;  %v279_v12 = vld [vmem:[%s1369_s9 + $0x10] sm:$0xf]  ;;  %v291_v13 = vmax.bf16 %v1155_v0, %v275_v7  ;;  %v292_v14 = vmax.bf16 %v1155_v0, %v276_v8  ;;  %v280_v15 = vld [vmem:[%s1369_s9 + $0x14] sm:$0xf]  ;;  %v293_v18 = vmax.bf16 %v1155_v0, %v277_v10 }
  0x6f   : > { %v281_v16 = vld [vmem:[%s1369_s9 + $0x18] sm:$0xf]  ;;  %v282_v17 = vld [vmem:[%s1369_s9 + $0x1c] sm:$0xf]  ;;  %v294_v19 = vmax.bf16 %v1155_v0, %v278_v11  ;;  %v295_v20 = vmax.bf16 %v1155_v0, %v279_v12  ;;  %v283_v21 = vld [vmem:[%s1369_s9 + $0x20] sm:$0xf]  ;;  %v296_v24 = vmax.bf16 %v1155_v0, %v280_v15 }
  0x70   : > { %501 = vmatpush1.bf16.msra.mxu0 %v967_v4  ;;  %v284_v22 = vld [vmem:[%s1369_s9 + $0x24] sm:$0xf]  ;;  %v285_v23 = vld [vmem:[%s1369_s9 + $0x28] sm:$0xf]  ;;  %v297_v25 = vmax.bf16 %v1155_v0, %v281_v16  ;;  %v298_v26 = vmax.bf16 %v1155_v0, %v282_v17  ;;  %v307_v27 = vunpack.c.l.bf16 %v291_v13  ;;  %v973_v28 = vld [vmem:[#allocation5 + $0x30] ss:$8 sps:$4 sm:$0xff]   ;;  %v299_v32 = vmax.bf16 %v1155_v0, %v283_v21 }
  0x71   : > { %502 = vmatprep.subr.bf16.mxu0 %v968_v5  ;;  %v286_v29 = vld [vmem:[%s1369_s9 + $0x2c] sm:$0xf]  ;;  %v287_v30 = vld [vmem:[%s1369_s9 + $0x30] sm:$0xf]  ;;  %v288_v31 = vld [vmem:[%s1369_s9 + $0x34] sm:$0xf]  ;;  %v300_v33 = vmax.bf16 %v1155_v0, %v284_v22  ;;  %v301_v34 = vmax.bf16 %v1155_v0, %v285_v23  ;;  %v308_v35 = vunpack.c.l.bf16 %v292_v14  ;;  %v309_v41 = vunpack.c.l.bf16 %v293_v18 }
  0x72   : > { %v289_v36 = vld [vmem:[%s1369_s9 + $0x38] sm:$0xf]  ;;  %v290_v37 = vld [vmem:[%s1369_s9 + $0x3c] sm:$0xf]  ;;  %v302_v38 = vmax.bf16 %v1155_v0, %v286_v29  ;;  %v303_v39 = vmax.bf16 %v1155_v0, %v287_v30  ;;  %v304_v40 = vmax.bf16 %v1155_v0, %v288_v31  ;;  %v310_v44 = vunpack.c.l.bf16 %v294_v19  ;;  %v974_v46 = vld [vmem:[#allocation7 + $0x40] sm:$0xff]   ;;  %s835_s12 = sshll.u32 %s1365_s17, 3 }
  0x73   : > { %v305_v42 = vmax.bf16 %v1155_v0, %v289_v36  ;;  %v1395_v43 = vmax.bf16 %v1155_v0, %v290_v37  ;;  %v311_v45 = vunpack.c.l.bf16 %v295_v20  ;;  %v312_v47 = vunpack.c.l.bf16 %v296_v24  ;;  %v975_v51 = vld [vmem:[#allocation7] sm:$0xff]   ;;  %868 = vmatprep.subr.bf16.mxu1 %v974_v46  ;;  %v976_v56 = vld [vmem:[#allocation7 + $0x48] sm:$0xff]   ;;  %v979_v7 = vld [vmem:[#allocation7 + $0x10] sm:$0xff]   ;;  %s863_s28 = sshll.u32 %s1208_s22, 7  ;;  %s272_s14 = scalar_lea.vmem [#allocation8], %s835_s12 }
  0x74   : > { %503 = vmatpush1.bf16.msra.mxu0 %v970_v6  ;;  %v313_v48 = vunpack.c.l.bf16 %v297_v25  ;;  %v314_v49 = vunpack.c.l.bf16 %v298_v26  ;;  %v315_v50 = vunpack.c.l.bf16 %v299_v32  ;;  %v316_v52 = vunpack.c.l.bf16 %v300_v33  ;;  %869 = vmatpush3.bf16.msra.mxu1 %v975_v51  ;;  %v977_v61 = vld [vmem:[#allocation7 + $0x8] sm:$0xff]   ;;  %v978_v6 = vld [vmem:[#allocation7 + $0x50] sm:$0xff]   ;;  %v980_v12 = vld [vmem:[#allocation7 + $0x58] sm:$0xff]   ;;  %s733_s15 = sshll.u32 %s272_s14, 4  ;;  %s1429_s23 = scalar_lea.hbm %s1478_s5, %s863_s28  ;;  %s1431_s15 = int_to_ptr.vmem [resolvable:$true] %s733_s15 }
  0x75   : > { %504 = vmatprep.subr.bf16.mxu0 %v971_v9  ;;  %v317_v53 = vunpack.c.l.bf16 %v301_v34  ;;  %v318_v54 = vunpack.c.l.bf16 %v302_v38  ;;  %v319_v55 = vunpack.c.l.bf16 %v303_v39  ;;  %v320_v57 = vunpack.c.l.bf16 %v304_v40  ;;  %870 = vmatprep.subr.bf16.mxu1 %v976_v56  ;;  %v981_v25 = vld [vmem:[#allocation7 + $0x18] sm:$0xff]   ;;  %v982_v38 = vld [vmem:[#allocation7 + $0x60] sm:$0xff]   ;;  %v984_v56 = vld [vmem:[#allocation7 + $0x68] sm:$0xff]   ;;  %s720_s7 = scalar_lea.sflag [#allocation4], %s1365_s17  ;;  %s1076_s6 = scalar_lea.vmem %s1431_s15, 128 }
  0x76   : > { %v321_v58 = vunpack.c.l.bf16 %v305_v42  ;;  %v322_v59 = vunpack.c.l.bf16 %v1395_v43  ;;  %v324_v60 = vsel %vm323_vm0, %v307_v27, 0.0  ;;  %v325_v62 = vsel %vm323_vm0, %v308_v35, 0.0  ;;  %v983_v51 = vld [vmem:[#allocation7 + $0x20] sm:$0xff]   ;;  %p1077_p11 = scmp.ne.s32.totalorder %s1431_s15, %s1076_s6  ;;  %p1492_p0 = scmp.ne.s32.totalorder %s1487_s29, 0 }
  0x77   : > { %v333_v63 = vsel %vm323_vm0, %v309_v41, 0.0  ;;  %v334_v0 = vsel %vm323_vm0, %v310_v44, 0.0  ;;  %v342_v1 = vsel %vm323_vm0, %v311_v45, 0.0  ;;  %v326_v2 = vadd.f32 %v325_v62, %v324_v60  ;;  %s1156_s22 = smov [#allocation8]  }
  0x78   : > { %505 = vmatpush1.bf16.msra.mxu0 %v973_v28  ;;  %v335_v3 = vadd.f32 %v334_v0, %v333_v63  ;;  %v343_v4 = vsel %vm323_vm0, %v312_v47, 0.0  ;;  %v351_v5 = vsel %vm323_vm0, %v313_v48, 0.0  ;;  %v352_v9 = vsel %vm323_vm0, %v314_v49, 0.0  ;;  %871 = vmatpush3.bf16.msra.mxu1 %v977_v61  ;;  %p1078_p1 = pnand %p1077_p11, %p1492_p0  ;;  %s1080_s8 = sshll.u32 %s1156_s22, 4  ;;  %s1081_s8 = int_to_ptr.vmem [resolvable:$false] %s1080_s8 }
  0x79   : > { %v344_v8 = vadd.f32 %v343_v4, %v342_v1  ;;  %v360_v10 = vsel %vm323_vm0, %v315_v50, 0.0  ;;  %v361_v11 = vsel %vm323_vm0, %v316_v52, 0.0  ;;  %v327_v13 = vrot.slane %v326_v2, 4  ;;  %872 = vmatprep.subr.bf16.mxu1 %v978_v6  ;;  %s1082_s9 = scalar_lea.vmem %s1081_s8, 256  ;;  %p1083_p5 = scmp.lt.s32.totalorder %s1431_s15, %s1081_s8 }
  0x7a   : > { %v336_v14 = vrot.slane %v335_v3, 4  ;;  %v353_v15 = vadd.f32 %v352_v9, %v351_v5  ;;  %v362_v16 = vadd.f32 %v361_v11, %v360_v10  ;;  %v369_v18 = vsel %vm323_vm0, %v317_v53, 0.0  ;;  %v985_v5 = vld [vmem:[#allocation7 + $0x28] sm:$0xff]   ;;  %p1079_p3 = pneg %p1078_p1  ;;  %p1084_p9 = scmp.lt.s32.totalorder %s1082_s9, %s1076_s6 }
  0x7b   : > { %v345_v17 = vrot.slane %v344_v8, 4  ;;  %v370_v19 = vsel %vm323_vm0, %v318_v54, 0.0  ;;  %v378_v20 = vsel %vm323_vm0, %v319_v55, 0.0  ;;  %v328_v21 = vadd.f32 %v327_v13, %v326_v2 }
  0x7c   : > { %v337_v22 = vadd.f32 %v336_v14, %v335_v3  ;;  %v354_v23 = vrot.slane %v353_v15, 4  ;;  %v363_v24 = vrot.slane %v362_v16, 4  ;;  %v371_v27 = vadd.f32 %v370_v19, %v369_v18  ;;  %873 = vmatpush3.bf16.msra.mxu1 %v979_v7  ;;  %p1085_p12 = por %p1084_p9, %p1083_p5 }
  0x7d   : > { %v346_v26 = vadd.f32 %v345_v17, %v344_v8  ;;  %v379_v28 = vsel %vm323_vm0, %v320_v57, 0.0  ;;  %v387_v29 = vsel %vm323_vm0, %v321_v58, 0.0  ;;  %v329_v30 = vrot.slane %v328_v21, 2  ;;  %874 = vmatprep.subr.bf16.mxu1 %v980_v12 }
  0x7e   : > { %v338_v31 = vrot.slane %v337_v22, 2  ;;  %v355_v32 = vadd.f32 %v354_v23, %v353_v15  ;;  %v364_v33 = vadd.f32 %v363_v24, %v362_v16  ;;  %v372_v35 = vrot.slane %v371_v27, 4  ;;  %p1086_p2 = pnand %p1085_p12, %p1079_p3 }
  0x7f   : > { %v347_v34 = vrot.slane %v346_v26, 2  ;;  %v380_v36 = vadd.f32 %v379_v28, %v378_v20  ;;  %v388_v37 = vsel %vm323_vm0, %v322_v59, 0.0  ;;  %vm440_vm1 = vcmask 1041409  }
  0x80   : > { %v330_v39 = vadd.f32 %v329_v30, %v328_v21  ;;  %v339_v40 = vadd.f32 %v338_v31, %v337_v22  ;;  %v356_v41 = vrot.slane %v355_v32, 2  ;;  %v365_v42 = vrot.slane %v364_v33, 2  ;;  %875 = vmatpush3.bf16.msra.mxu1 %v981_v25 }
  0x81   : > { %vm442_vm2 = vcmask 1042434   ;;  %v348_v43 = vadd.f32 %v347_v34, %v346_v26  ;;  %v373_v44 = vadd.f32 %v372_v35, %v371_v27  ;;  %v381_v45 = vrot.slane %v380_v36, 4  ;;  %876 = vmatprep.subr.bf16.mxu1 %v982_v38  ;;  %v987_v38 = vld [vmem:[#allocation7 + $0x30] sm:$0xff]  }
  0x82   : > { %v389_v46 = vadd.f32 %v388_v37, %v387_v29  ;;  %vm444_vm3 = vcmask 1043459   ;;  %v331_v47 = vrot.slane %v330_v39, 1  ;;  %v340_v48 = vrot.slane %v339_v40, 1  ;;  %v986_v37 = vld [vmem:[#allocation7 + $0x70] sm:$0xff]  }
  0x83   : > { %v357_v49 = vadd.f32 %v356_v41, %v355_v32  ;;  %v366_v50 = vadd.f32 %v365_v42, %v364_v33  ;;  %v349_v52 = vrot.slane %v348_v43, 1  ;;  %v374_v53 = vrot.slane %v373_v44, 2 }
  0x84   : > { %v382_v54 = vadd.f32 %v381_v45, %v380_v36  ;;  %v390_v55 = vrot.slane %v389_v46, 4  ;;  %v332_v57 = vadd.f32 %v331_v47, %v330_v39  ;;  %v341_v58 = vadd.f32 %v340_v48, %v339_v40  ;;  %877 = vmatpush3.bf16.msra.mxu1 %v983_v51  ;;  %v988_v39 = vld [vmem:[#allocation7 + $0x78] sm:$0xff]  }
  0x85   : > { %v358_v59 = vrot.slane %v357_v49, 1  ;;  %v367_v60 = vrot.slane %v366_v50, 1  ;;  %v350_v61 = vadd.f32 %v349_v52, %v348_v43  ;;  %v375_v62 = vadd.f32 %v374_v53, %v373_v44  ;;  %878 = vmatprep.subr.bf16.mxu1 %v984_v56  ;;  %v989_v40 = vld [vmem:[#allocation7 + $0x38] sm:$0xff]   ;;  %v412_v44 = vld [vmem:[%s1475_s2] sm:$0x3] }
  0x86   : > { %v383_v63 = vrot.slane %v382_v54, 2  ;;  %v391_v0 = vadd.f32 %v390_v55, %v389_v46  ;;  %v396_v3 = vpack.c.bf16 %v332_v57, %v332_v57  ;;  %v397_v4 = vpack.c.bf16 %v341_v58, %v341_v58 }
  0x87   : > { %v359_v1 = vadd.f32 %v358_v59, %v357_v49  ;;  %v368_v2 = vadd.f32 %v367_v60, %v366_v50  ;;  %v376_v6 = vrot.slane %v375_v62, 1  ;;  %v398_v9 = vpack.c.bf16 %v350_v61, %v350_v61  ;;  %v845_v59 = vld [vmem:[%s1477_s4] ss:$0 sm:$0xff] }
  0x88   : > { %v384_v7 = vadd.f32 %v383_v63, %v382_v54  ;;  %v392_v8 = vrot.slane %v391_v0, 2  ;;  %v432_v12 = vunpack.c.l.b16 %v396_v3  ;;  %v433_v13 = vunpack.c.l.b16 %v397_v4  ;;  %879 = vmatpush3.bf16.msra.mxu1 %v985_v5 }
  0x89   : > { %v399_v10 = vpack.c.bf16 %v359_v1, %v359_v1  ;;  %v400_v11 = vpack.c.bf16 %v368_v2, %v368_v2  ;;  %v377_v14 = vadd.f32 %v376_v6, %v375_v62  ;;  %v434_v17 = vunpack.c.l.b16 %v398_v9  ;;  %880 = vmatprep.subr.bf16.mxu1 %v986_v37 }
  0x8a   : > { %v385_v15 = vrot.slane %v384_v7, 1  ;;  %v393_v16 = vadd.f32 %v392_v8, %v391_v0  ;;  %v441_v20 = vsel %vm440_vm1, %v433_v13, %v432_v12  ;;  %vm446_vm4 = vcmask 1044484  }
  0x8b   : > { %v435_v18 = vunpack.c.l.b16 %v399_v10  ;;  %v436_v19 = vunpack.c.l.b16 %v400_v11  ;;  %v401_v23 = vpack.c.bf16 %v377_v14, %v377_v14  ;;  %v443_v24 = vsel %vm442_vm2, %v434_v17, %v441_v20 }
  0x8c   : > { %v386_v21 = vadd.f32 %v385_v15, %v384_v7  ;;  %v394_v22 = vrot.slane %v393_v16, 1  ;;  %vm448_vm5 = vcmask 1045509   ;;  %vm450_vm6 = vcmask 1046534   ;;  %881 = vmatpush3.bf16.msra.mxu1 %v987_v38 }
  0x8d   : > { %v445_v25 = vsel %vm444_vm3, %v435_v18, %v443_v24  ;;  %v437_v28 = vunpack.c.l.b16 %v401_v23  ;;  %vm452_vm7 = vcmask 1047559   ;;  %882 = vmatprep.subr.bf16.mxu1 %v988_v39  ;;  %v414_v41 = vlaneseq }
  0x8e   : > { %v395_v26 = vadd.f32 %v394_v22, %v393_v16  ;;  %v402_v27 = vpack.c.bf16 %v386_v21, %v386_v21  ;;  %v447_v29 = vsel %vm446_vm4, %v436_v19, %v445_v25 }
  0x8f   : > { %v449_v32 = vsel %vm448_vm5, %v437_v28, %v447_v29  ;;  %v415_v42 = vshrl.u32 %v414_v41, 7 }
  0x90   : > { %v403_v30 = vpack.c.bf16 %v395_v26, %v395_v26  ;;  %v438_v31 = vunpack.c.l.b16 %v402_v27  ;;  %883 = vmatpush3.bf16.msra.mxu1 %v989_v40 }
  0x91   : > { %v416_v43 = vsub.s32 0, %v415_v42  ;;  %v420_v45 = vsub.s32 1, %v415_v42 }
  0x92   : > { %v439_v33 = vunpack.c.l.b16 %v403_v30  ;;  %v451_v34 = vsel %vm450_vm6, %v438_v31, %v449_v32 }
  0x93   : > { %v417_v46 = vrot.slane %v412_v44, %v416_v43  ;;  %v421_v47 = vrot.slane %v412_v44, %v420_v45 }
  0x94   : > { %v453_v35 = vsel %vm452_vm7, %v439_v33, %v451_v34 }
  0x95   : > { %v454_v36 = vpack.c.b16 %v453_v35, %v453_v35 }
  0x97   : > { %844 = vmatmul.mubr.msk.bf16.vlgmr.msra.gmra.mrb[0].mxu0 %vm323_vm0, %v454_v36 }
 0x16a   : > { %v532_v48 = vpop.f32.mrb[0].mxu0 }
 0x16b   : > { %v533_v49 = vadd.f32 %v532_v48, %v417_v46  ;;  %v534_v50 = vpop.f32.mrb[1].mxu0 }
 0x16c   : > { %v535_v51 = vadd.f32 %v534_v50, %v421_v47  ;;  %v536_v52 = vpop.f32.mrb[2].mxu0 }
 0x16d   : > { %v539_v53 = vmax.f32 %v533_v49, 0.0  ;;  %v537_v54 = vpop.f32.mrb[3].mxu0 }
 0x16e   : > { %v540_v55 = vmax.f32 %v535_v51, 0.0 }
 0x16f   : > { %v541_v57 = vpack.c.bf16 %v539_v53, %v539_v53 }
 0x170   : > { %v542_v56 = vpack.c.bf16 %v540_v55, %v540_v55 }
 0x172   : > { %710 = vmatprep.mubr.bf16.mxu1 %v542_v56 }
 0x173   : > { %711 = vmatmul.mubr.bf16.vlgmr.msra.gmra.mrb[0].mxu1 %v541_v57 }
 0x246   : > { %v884_v58 = vpop.f32.mrb[0].mxu1 }
 0x247   : > { %v885_v60 = vpop.f32.mrb[1].mxu1 }
 0x248   : > { %v886_v61 = vadd.f32 %v885_v60, %v884_v58  ;;  %v887_v62 = vpop.f32.mrb[2].mxu1 }
 0x249   : > { %v888_v63 = vpop.f32.mrb[3].mxu1 }
 0x24a   : > { %v713_v0 = vadd.f32 %v886_v61, %v845_v59 }
 0x24c   : > { %718 = vst [vmem:[%s272_s14] sm:$0xff] %v713_v0 }
 0x24d   : > { %1089 = shalt.err (!%p1086_p2)
}
 0x24e   : > { %s1090_s17 = scalar_lea.hbm %s1429_s23, 128  ;;  %s1094_s12 = scalar_lea.hbm %s1478_s5, 256 }
 0x24f   : > { %p1091_p13 = scmp.ne.s32.totalorder %s1429_s23, %s1090_s17  ;;  %p1095_p4 = scmp.lt.u32.totalorder %s1429_s23, %s1478_s5 }
 0x250   : > { %p1096_p7 = scmp.lt.u32.totalorder %s1094_s12, %s1090_s17  ;;  %p1098_p11 = scmp.lt.u32.totalorder %s1090_s17, %s1429_s23 }
 0x251   : > { %p1092_p6 = pnand %p1091_p13, %p1492_p0 }
 0x252   : > { %p1097_p8 = por %p1096_p7, %p1095_p4 }
 0x253   : > { %p1093_p10 = pneg %p1092_p6 }
 0x254   : > { %p1099_p1 = por %p1098_p11, %p1097_p8 }
 0x256   : > { %p1100_p3 = pnand %p1099_p1, %p1093_p10 }
 0x258   : > { %1103 = shalt.err (!%p1100_p3)
}
 0x259   : > { %900 = dma.vmem_to_hbm [thread:$0]  (%p1492_p0), %s1431_s15, 128, %s1429_s23, %s720_s7  }
 0x25a PF: > { %s745_s28 = sand.u32 1, %s1134_s18   ;;  %p1493_p5 = scmp.ne.s32.totalorder %s1483_s25, 0 }
 0x25b   : > { %p1494_p9 = scmp.ge.s32.totalorder %s1146_s21, 2  ;;  %s746_s14 = scalar_lea.sflag [#allocation4], %s745_s28 }
 0x25d   : > { %p914_p12 = pnand %p1494_p9, %p1493_p5 }
 0x25f   : > { %1129 = dma.done.wait (!%p914_p12), %s746_s14, 128  }
 0x260   : > { %1131 = vsyncadd (!%p914_p12), %s746_s14, 4294967168  ;;  %p19_p2 = scmp.ge.s32.totalorder %s1300_s16, 4   ;;  %s1495_s18 = smov %s1138_s19 }
 0x261   : > { %s1496_s19 = smov %s1142_s20  ;;  %s1497_s20 = smov %s1309_s27 }
 0x262   : > { %s1498_s21 = smov %s1300_s16  ;;  %21 = sbr.rel (!%p19_p2) target bundleno = 6 (0x6), region = 93 }
 0x269   :  { %751 = vsyncpa [#allocation3], 1 }
 0x26a   :  { %753 = vsyncpa [#allocation3 + $0x1], 1 }
 0x26b   :  { %754 = vsyncpa [#allocation6], 1 }
 0x26c   :  { %755 = vsyncpa [#allocation4], 1 }
 0x26d   :  { %757 = vsyncpa [#allocation4 + $0x1], 1 }

</bundles_post_ra>
